<compile_context>
chip_gen: v7x
topology: tpu7x:2x2x1
jax: 0.10.0
libtpu: 0.0.40
codegen_flags: <defaults>
</compile_context>

<pallas_src>
import math
import functools

import jax
import jax.numpy as jnp
from jax import lax
from jax.experimental import pallas as pl
from jax.experimental.pallas import tpu as pltpu


# ----------------------------- tiling helpers --------------------------------
def _pick_tile(dim, target, align):
    """Largest tile <= target that is a multiple of `align` and divides `dim`.
    Falls back to the full dimension (always legal for a BlockSpec)."""
    if dim <= target:
        return dim
    t = (min(target, dim) // align) * align
    while t >= align:
        if dim % t == 0:
            return t
        t -= align
    return dim


def _pick_q_tile(m, span, target=256):
    """Query tile: prefer W = TQ + span to be a multiple of 128 (lane-dense score
    vregs / unmasked stores), otherwise the largest legal tile <= target."""
    if m <= 8:
        return m
    cands = [t for t in range(8, min(m, target) + 1, 8) if m % t == 0]
    if not cands:
        return m
    best = max(cands)
    aligned = [t for t in cands if (t + span) % 128 == 0]
    if aligned and max(aligned) >= max(64, best // 2):
        return max(aligned)
    return best


def _heads_per_block(nb_heads, head_dim):
    """Smallest head-group size G (dividing nb_heads) with G*head_dim % 128 == 0
    so attention blocks stay lane-dense; falls back to all heads (full hidden)."""
    for g in range(1, nb_heads + 1):
        if nb_heads % g == 0 and (g * head_dim) % 128 == 0:
            return g
    return nb_heads


def _vmem_limit_bytes(block_bytes, scratch_bytes=0):
    """Scoped-VMEM request derived from actual block residency (x2 for the
    double-buffered pipeline) and capped by the chip's physical VMEM."""
    need = 2 * block_bytes + scratch_bytes + (8 << 20)
    cap = 48 << 20                       # safe default (v7x physical is 64 MiB)
    try:
        cap = int(pltpu.get_tpu_info().vmem_capacity_bytes) * 3 // 4
    except Exception:
        pass
    return int(max(32 << 20, min(need, cap)))


# ----------------------------- projection kernel -----------------------------
def _matmul_kernel(x_ref, w_ref, o_ref, acc_ref, *, compute_dtype):
    # y = x @ w with w already laid out (in_features, out_features): native MXU
    # RHS feed (sublane contraction), no per-tile transpose/relayout.
    @pl.when(pl.program_id(2) == 0)
    def _init():
        acc_ref[...] = jnp.zeros_like(acc_ref)

    acc_ref[...] += jnp.dot(x_ref[...].astype(compute_dtype),
                            w_ref[...].astype(compute_dtype),
                            preferred_element_type=jnp.float32)

    @pl.when(pl.program_id(2) == pl.num_programs(2) - 1)
    def _done():
        o_ref[...] = acc_ref[...].astype(o_ref.dtype)


def linear_nobias(x, w_t, *, compute_dtype=None, out_dtype=None,
                  tile_m=512, tile_n=512, tile_k=1024):
    """x @ w_t where w_t is (in_features, out_features) (i.e. torch weight.T)."""
    compute_dtype = compute_dtype or x.dtype
    out_dtype = out_dtype or x.dtype
    lead, kin = x.shape[:-1], x.shape[-1]
    rows = math.prod(lead)
    n_out = w_t.shape[1]
    x2 = x.reshape(rows, kin)

    tm = _pick_tile(rows, tile_m, 8)
    tn = _pick_tile(n_out, tile_n, 128)
    tk = _pick_tile(kin, tile_k, 128)

    blk_bytes = (tm * tk * x2.dtype.itemsize + tk * tn * w_t.dtype.itemsize
                 + tm * tn * jnp.dtype(out_dtype).itemsize)
    kernel = functools.partial(_matmul_kernel, compute_dtype=compute_dtype)
    y = pl.pallas_call(
        kernel,
        out_shape=jax.ShapeDtypeStruct((rows, n_out), out_dtype),
        grid=(rows // tm, n_out // tn, kin // tk),
        in_specs=[pl.BlockSpec((tm, tk), lambda i, j, k: (i, k)),
                  pl.BlockSpec((tk, tn), lambda i, j, k: (k, j))],
        out_specs=pl.BlockSpec((tm, tn), lambda i, j, k: (i, j)),
        scratch_shapes=[pltpu.VMEM((tm, tn), jnp.float32)],
        compiler_params=pltpu.CompilerParams(
            dimension_semantics=("parallel", "parallel", "arbitrary"),
            vmem_limit_bytes=_vmem_limit_bytes(blk_bytes,
                                               scratch_bytes=tm * tn * 4)),
    )(x2, w_t)
    return y.reshape(*lead, n_out)


# ----------------------------- attention kernel ------------------------------
def _skew_rows(p, width, row, use_roll):
    """Return S (rows, width) with S[r, c] = p[r, c - r] for r <= c < r+L, 0 else.

    Log-shift doubling (ceil(log2 rows) passes).  With `use_roll` each shift is a
    lane rotation on the XLU (the wrapped lanes are provably zero for every row
    that selects the rotated value); otherwise a zero-concat shift on the VPU.
    `row` is the (rows, 1) iota shared with the band mask.
    """
    tq, l = p.shape
    x = jnp.concatenate([p, jnp.zeros((tq, width - l), p.dtype)], axis=1)
    shift = 1
    while shift < tq:
        if use_roll:
            shifted = pltpu.roll(x, shift, axis=1)
        else:
            shifted = jnp.concatenate(
                [jnp.zeros((tq, shift), x.dtype), x[:, :width - shift]], axis=1)
        x = jnp.where((row & shift) != 0, shifted, x)
        shift *= 2
    return x


def _seq_attn_kernel(q_ref, k_ref, v_ref, pe_ref, o_ref, *,
                     attn_span, head_dim, heads_per_blk, q_tile, use_roll):
    L, D, G, TQ = attn_span, head_dim, heads_per_blk, q_tile
    W = TQ + L                                  # key window for this query tile
    inv_scale = 1.0 / math.sqrt(D)

    qi = pl.program_id(2)
    i0 = pl.multiple_of(qi * TQ, TQ)

    # Fold 1/sqrt(D) into q once (both score terms are q-linear); the exact
    # `== 0` sentinel is scaled accordingly (a zero key row still dots to 0).
    q_all = q_ref[0] * inv_scale                # (TQ, G*D) compute dtype
    k_win = k_ref[0, pl.ds(i0, W), :]           # (W,  G*D) banded key window
    v_win = v_ref[0, pl.ds(i0, W), :]           # (W,  G*D)
    pe = pe_ref[0]                              # (D, L)

    row = lax.broadcasted_iota(jnp.int32, (TQ, 1), 0)
    col = lax.broadcasted_iota(jnp.int32, (TQ, W), 1)
    band = (col >= row) & (col < row + L)       # relative offsets 0..L-1

    outs = []
    for g in range(G):                          # small static head group
        sl = slice(g * D, (g + 1) * D)
        q, k, v = q_all[:, sl], k_win[:, sl], v_win[:, sl]

        # content scores (f32 accumulation; exact `== 0` sentinel as in torch
        # `attn_cont[attn_cont == 0] = -1e6`)
        s = lax.dot_general(q, k, (((1,), (1,)), ((), ())),
                            preferred_element_type=jnp.float32)       # (TQ, W)
        cont = jnp.where(s == 0.0, -1.0e6 * inv_scale, s)

        # relative positional scores, skewed onto the band diagonals
        p = jnp.dot(q, pe, preferred_element_type=jnp.float32)        # (TQ, L)
        pos = _skew_rows(p, W, row, use_roll)                         # (TQ, W)

        # outside the band the probability must be exactly 0 (== _skew zero pad)
        logits = jnp.where(band, cont + pos, -1.0e30)
        m = jnp.max(logits, axis=-1, keepdims=True)
        e = jnp.exp(logits - m)
        denom = jnp.sum(e, axis=-1, keepdims=True)
        probs = e * pl.reciprocal(denom, approx=True)
        # dropout is identity here (eval mode / p = 0)

        out_g = jnp.dot(probs.astype(v.dtype), v,
                        preferred_element_type=jnp.float32).astype(o_ref.dtype)
        if D % 128 == 0:
            o_ref[0, :, sl] = out_g             # full-lane, unmasked store
        else:
            outs.append(out_g)
    if D % 128 != 0:
        # TODO(synk): for D not a multiple of 128 the per-group lane slices force
        # relayouts; a head-major projection layout (or padding D to 128) would
        # remove them.
        o_ref[0] = jnp.concatenate(outs, axis=1)


def seq_attention(q, k, v, key_pe, *, nb_heads, attn_span, q_tile_target=256):
    B, M, H = q.shape
    ML = k.shape[1]
    K = nb_heads
    D = H // K
    L = attn_span
    assert ML == M + L

    G = _heads_per_block(K, D)
    GD = G * D
    NG = K // G
    TQ = _pick_q_tile(M, L, q_tile_target)
    NQ = M // TQ
    W = TQ + L
    use_roll = (W >= 128) and (W % 128 == 0)

    itemsize = jnp.dtype(q.dtype).itemsize
    blk_bytes = (2 * TQ * GD + 2 * ML * GD + D * L) * itemsize

    kernel = functools.partial(_seq_attn_kernel, attn_span=L, head_dim=D,
                               heads_per_blk=G, q_tile=TQ, use_roll=use_roll)
    return pl.pallas_call(
        kernel,
        out_shape=jax.ShapeDtypeStruct((B, M, H), q.dtype),
        grid=(B, NG, NQ),
        in_specs=[
            pl.BlockSpec((1, TQ, GD), lambda b, g, qi: (b, qi, g)),
            pl.BlockSpec((1, ML, GD), lambda b, g, qi: (b, 0, g)),   # resident across qi
            pl.BlockSpec((1, ML, GD), lambda b, g, qi: (b, 0, g)),
            pl.BlockSpec((1, D, L), lambda b, g, qi: (0, 0, 0)),
        ],
        out_specs=pl.BlockSpec((1, TQ, GD), lambda b, g, qi: (b, qi, g)),
        compiler_params=pltpu.CompilerParams(
            # No cross-step carry anywhere -> fully parallel (lets v7x's two
            # TensorCores split the qi axis even when B * NG is small).
            dimension_semantics=("parallel", "parallel", "parallel"),
            vmem_limit_bytes=_vmem_limit_bytes(blk_bytes)),
    )(q, k, v, key_pe)


# ----------------------------- multi-head wrapper -----------------------------
def multi_head_seq_attention(query, key, value, key_pe, Wq, Wk, Wv, Wo, *,
                             nb_heads, attn_span, compute_dtype=jnp.bfloat16):
    """Forward pass of MultiHeadSeqAttention (adapt_span off, no persistent mem,
    dropout=0/eval).  Wq/Wk/Wv/Wo are torch nn.Linear(bias=False) weights, i.e.
    (out_features, in_features); they are transposed once here so the matmul
    kernel gets a native (in, out) RHS."""
    out_dtype = query.dtype
    wq_t = Wq.T.astype(compute_dtype)
    wk_t = Wk.T.astype(compute_dtype)
    wv_t = Wv.T.astype(compute_dtype)
    wo_t = Wo.T.astype(compute_dtype)

    # Projections stay in [B, T, H]; the attention BlockSpecs do the head split,
    # so there are no head-transpose round-trips through HBM.  Q/K/V projection
    # outputs are kept in compute_dtype (bf16 by default) -> halves the resident
    # K/V VMEM footprint and the HBM traffic into the attention kernel.
    qp = linear_nobias(query, wq_t, compute_dtype=compute_dtype, out_dtype=compute_dtype)
    kp = linear_nobias(key, wk_t, compute_dtype=compute_dtype, out_dtype=compute_dtype)
    vp = linear_nobias(value, wv_t, compute_dtype=compute_dtype, out_dtype=compute_dtype)
    att = seq_attention(qp, kp, vp, key_pe.astype(compute_dtype),
                        nb_heads=nb_heads, attn_span=attn_span)
    return linear_nobias(att, wo_t, compute_dtype=compute_dtype, out_dtype=out_dtype)
    # TODO(synk): AdaptiveSpan soft masking and PersistentMemory branches are not
    # implemented (module constructed with adapt_span_enabled=False, pers_mem_size=0).


# ----------------------------- pure-JAX reference -----------------------------
def _unskew_ref(X):
    B, M, Lf = X.shape
    L = Lf - M
    X = X.reshape(B, -1)
    X = jnp.pad(X, ((0, 0), (0, M)))
    X = X.reshape(B, M, M + L + 1)
    return X[:, :, :L]


def _skew_ref(X, pad_value):
    B, M, L = X.shape
    X = jnp.pad(X, ((0, 0), (0, 0), (0, M + 1)), constant_values=pad_value)
    X = X.reshape(B, -1)[:, :-M]
    return X.reshape(B, M, M + L)


def reference_forward(query, key, value, key_pe, Wq, Wk, Wv, Wo, *, nb_heads, attn_span):
    B, M, H = query.shape
    K = nb_heads
    D = H // K
    hi = lax.Precision.HIGHEST

    def lin(x, w):
        return jnp.einsum("bth,oh->bto", x, w, precision=hi)

    def hr(x):
        Bx, T, _ = x.shape
        return x.reshape(Bx, T, K, D).transpose(0, 2, 1, 3).reshape(Bx * K, T, D)

    q = hr(lin(query, Wq))
    k = hr(lin(key, Wk))
    v = hr(lin(value, Wv))

    attn_cont = jnp.einsum("bmd,bnd->bmn", q, k, precision=hi)
    attn_cont = _unskew_ref(attn_cont)
    attn_cont = jnp.where(attn_cont == 0, -1.0e6, attn_cont)
    attn_pos = jnp.einsum("bmd,dl->bml", q, key_pe[0], precision=hi)
    attn = (attn_cont + attn_pos) / math.sqrt(D)
    attn = jax.nn.softmax(attn, axis=-1)
    attn_sk = _skew_ref(attn, 0.0)
    out = jnp.einsum("bmn,bnd->bmd", attn_sk, v, precision=hi)
    out = out.reshape(B, K, M, D).transpose(0, 2, 1, 3).reshape(B, M, H)
    return lin(out, Wo)


# ------------------------------------ main ------------------------------------
def _run_case(seed, B, M, H, K, L, n_zero_keys, compute_dtype, atol, rtol, label):
    D = H // K
    ks = jax.random.split(jax.random.PRNGKey(seed), 8)
    query = jax.random.normal(ks[0], (B, M, H), jnp.float32)
    key_in = jax.random.normal(ks[1], (B, M + L, H), jnp.float32)
    if n_zero_keys:
        # empty-cache rows -> exercises the exact "== 0 -> -1e6" sentinel
        key_in = key_in.at[:, :n_zero_keys, :].set(0.0)
    value_in = jax.random.normal(ks[2], (B, M + L, H), jnp.float32)
    key_pe = jax.random.normal(ks[3], (1, D, L), jnp.float32)

    scale = 1.0 / math.sqrt(H)
    Wq = jax.random.normal(ks[4], (H, H), jnp.float32) * scale
    Wk = jax.random.normal(ks[5], (H, H), jnp.float32) * scale
    Wv = jax.random.normal(ks[6], (H, H), jnp.float32) * scale
    Wo = jax.random.normal(ks[7], (H, H), jnp.float32) * scale

    out = multi_head_seq_attention(query, key_in, value_in, key_pe,
                                   Wq, Wk, Wv, Wo, nb_heads=K, attn_span=L,
                                   compute_dtype=compute_dtype)
    out = jax.block_until_ready(out)
    ref = reference_forward(query, key_in, value_in, key_pe,
                            Wq, Wk, Wv, Wo, nb_heads=K, attn_span=L)
    assert out.shape == (B, M, H)
    err = jnp.max(jnp.abs(out - ref))
    assert jnp.allclose(out, ref, atol=atol, rtol=rtol), \
        f"{label}: max abs err = {err}"


if __name__ == "__main__":
    # tiny config (D < 128 / W < 128 fallback paths), f32 MXU path, tight check
    _run_case(0, B=2, M=8, H=32, K=2, L=8, n_zero_keys=3,
              compute_dtype=jnp.float32, atol=2e-3, rtol=2e-3, label="tiny/f32")
    # same tiny config through the bf16 MXU path (== 0 sentinel regression test;
    # looser tolerance reflects bf16 rounding vs the f32 reference)
    _run_case(0, B=2, M=8, H=32, K=2, L=8, n_zero_keys=3,
              compute_dtype=jnp.bfloat16, atol=8e-2, rtol=8e-2, label="tiny/bf16")
    # lane-aligned config: D=128 (direct per-group stores), W=256 (pltpu.roll skew)
    _run_case(0, B=2, M=128, H=256, K=2, L=128, n_zero_keys=7,
              compute_dtype=jnp.bfloat16, atol=8e-2, rtol=8e-2, label="aligned/bf16")
    print("KERNEL_OK")
</pallas_src>

<mosaic_0001>
module attributes {stable_mosaic.version = 11 : i64} {
  func.func @_matmul_kernel(%arg0: i32, %arg1: i32, %arg2: i32, %arg3: memref<16x32xf32, #tpu.memory_space<vmem>>, %arg4: memref<32x32xf32, #tpu.memory_space<vmem>>, %arg5: memref<16x32xf32, #tpu.memory_space<vmem>>, %arg6: memref<16x32xf32, #tpu.memory_space<vmem>>) attributes {dimension_semantics = [#tpu.dimension_semantics<parallel>, #tpu.dimension_semantics<parallel>, #tpu.dimension_semantics<arbitrary>], iteration_bounds = array<i64: 1, 1, 1>, scalar_prefetch = 0 : i64, scratch_operands = 1 : i64, tpu.core_type = #tpu.core_type<tc>, window_params = [{transform_indices = @transform_0, window_bounds = array<i64: 16, 32>}, {transform_indices = @transform_1, window_bounds = array<i64: 32, 32>}, {transform_indices = @transform_2, window_bounds = array<i64: 16, 32>}]} {
    %c0_i32 = arith.constant 0 : i32
    %0 = arith.cmpi eq, %arg2, %c0_i32 : i32
    %1 = arith.extui %0 : i1 to i32
    %c0_i32_0 = arith.constant 0 : i32
    %2 = arith.cmpi ne, %1, %c0_i32_0 : i32
    scf.if %2 {
      %cst_10 = arith.constant 0.000000e+00 : f32
      %12 = vector.broadcast %cst_10 : f32 to vector<16x32xf32>
      %c0_11 = arith.constant 0 : index
      %c0_12 = arith.constant 0 : index
      %13 = vector.load %arg6[%c0_11, %c0_12] : memref<16x32xf32, #tpu.memory_space<vmem>>, vector<16x32xf32>
      tpu.vector_store %arg6[%c0_11, %c0_12], %12 {strides = array<i32>} : memref<16x32xf32, #tpu.memory_space<vmem>>, vector<16x32xf32>,
    } else {
    }
    %c0 = arith.constant 0 : index
    %c0_1 = arith.constant 0 : index
    %3 = vector.load %arg6[%c0, %c0_1] : memref<16x32xf32, #tpu.memory_space<vmem>>, vector<16x32xf32>
    %c0_2 = arith.constant 0 : index
    %c0_3 = arith.constant 0 : index
    %4 = vector.load %arg3[%c0_2, %c0_3] : memref<16x32xf32, #tpu.memory_space<vmem>>, vector<16x32xf32>
    %c0_4 = arith.constant 0 : index
    %c0_5 = arith.constant 0 : index
    %5 = vector.load %arg4[%c0_4, %c0_5] : memref<32x32xf32, #tpu.memory_space<vmem>>, vector<32x32xf32>
    %cst = arith.constant dense<0.000000e+00> : vector<16x32xf32>
    %6 = tpu.matmul %4, %5, %cst {dimension_numbers = #tpu.dot_dimension_numbers<[1], [0], [0], [1], [0, 0, 1, 1], [], []>} : vector<16x32xf32>, vector<32x32xf32>, vector<16x32xf32> -> vector<16x32xf32>
    %7 = arith.addf %3, %6 : vector<16x32xf32>
    %c0_6 = arith.constant 0 : index
    %c0_7 = arith.constant 0 : index
    %8 = vector.load %arg6[%c0_6, %c0_7] : memref<16x32xf32, #tpu.memory_space<vmem>>, vector<16x32xf32>
    tpu.vector_store %arg6[%c0_6, %c0_7], %7 {strides = array<i32>} : memref<16x32xf32, #tpu.memory_space<vmem>>, vector<16x32xf32>,
    %c0_i32_8 = arith.constant 0 : i32
    %9 = arith.cmpi eq, %arg2, %c0_i32_8 : i32
    %10 = arith.extui %9 : i1 to i32
    %c0_i32_9 = arith.constant 0 : i32
    %11 = arith.cmpi ne, %10, %c0_i32_9 : i32
    scf.if %11 {
      %c0_10 = arith.constant 0 : index
      %c0_11 = arith.constant 0 : index
      %12 = vector.load %arg6[%c0_10, %c0_11] : memref<16x32xf32, #tpu.memory_space<vmem>>, vector<16x32xf32>
      %c0_12 = arith.constant 0 : index
      %c0_13 = arith.constant 0 : index
      %13 = vector.load %arg5[%c0_12, %c0_13] : memref<16x32xf32, #tpu.memory_space<vmem>>, vector<16x32xf32>
      tpu.vector_store %arg5[%c0_12, %c0_13], %12 {strides = array<i32>} : memref<16x32xf32, #tpu.memory_space<vmem>>, vector<16x32xf32>,
    } else {
    }
    return
  }
  func.func @transform_0(%arg0: i32, %arg1: i32, %arg2: i32) -> (i32, i32) {
    %c0_i32 = arith.constant 0 : i32
    return %arg0, %arg2 : i32, i32
  }
  func.func @transform_1(%arg0: i32, %arg1: i32, %arg2: i32) -> (i32, i32) {
    %c0_i32 = arith.constant 0 : i32
    return %arg2, %arg1 : i32, i32
  }
  func.func @transform_2(%arg0: i32, %arg1: i32, %arg2: i32) -> (i32, i32) {
    %c0_i32 = arith.constant 0 : i32
    return %arg0, %arg1 : i32, i32
  }
}

</mosaic_0001>

<bundles_post_ra>
// kernel: tpu_custom_call.1
= control target key start
LH: loop header
LB: loop body
LE: loop exit
PB: predicated region body
PF: predicated region fallthrough
CT: control target
= control target key end

     0   :  { %7 = vsyncpa [#allocation4], 0  ;;  %s345_s0 = inlined_call_operand.hbm [shape: f32[16,32], index: 0, kind: input, shape index: {}]   ;;  %s346_s1 = inlined_call_operand.hbm [shape: f32[32,32], index: 1, kind: input, shape index: {}]   ;;  %s347_s2 = inlined_call_operand.hbm [shape: f32[16,32], index: 2, kind: output, shape index: {}]  }
   0x1   :  { %8 = vsyncpa [#allocation7], 0 }
   0x2   :  { %9 = vsyncpa [#allocation5], 0  ;;  %s271_s9 = smov [#allocation3]   ;;  %s199_s13 = scalar_lea.hbm %s345_s0, 256 }
   0x3   :  { %s15_s10 = sshll.u32 %s271_s9, 4  ;;  %p200_p0 = scmp.ne.s32.totalorder %s345_s0, %s199_s13  ;;  %s16_s10 = int_to_ptr.vmem [resolvable:$true] %s15_s10 }
   0x4   :  { %p203_p1 = scmp.lt.u32.totalorder %s199_s13, %s345_s0 }
   0x6   :  { %p205_p2 = pnand %p203_p1, %p200_p0 }
   0x8   :  { %208 = shalt.err (!%p205_p2)
}
   0x9   :  { %s209_s18 = scalar_lea.vmem %s16_s10, 256  ;;  %p214_p4 = scmp.lt.s32.totalorder %s16_s10, %s16_s10 }
   0xa   :  { %p210_p3 = scmp.ne.s32.totalorder %s16_s10, %s209_s18  ;;  %p215_p5 = scmp.lt.s32.totalorder %s209_s18, %s209_s18 }
   0xc   :  { %p216_p6 = por %p215_p5, %p214_p4 }
   0xe   :  { %p217_p7 = pnand %p216_p6, %p210_p3 }
  0x10   :  { %220 = shalt.err (!%p217_p7)
}
  0x11   :  { %s272_s19 = smov 128   ;;  %s273_s20 = smov 8  }
  0x12   :  { %21 = dma.hbm_to_vmem [thread:$0]  %s345_s0, 256, %s16_s10, [#allocation4], %s272_s19, %s272_s19, %s273_s20  }
  0x13   :  { %s274_s23 = smov [#allocation6]   ;;  %s221_s27 = scalar_lea.hbm %s346_s1, 512 }
  0x14   :  { %s27_s24 = sshll.u32 %s274_s23, 4  ;;  %p222_p8 = scmp.ne.s32.totalorder %s346_s1, %s221_s27  ;;  %s28_s24 = int_to_ptr.vmem [resolvable:$true] %s27_s24 }
  0x15   :  { %p225_p9 = scmp.lt.u32.totalorder %s221_s27, %s346_s1 }
  0x17   :  { %p227_p10 = pnand %p225_p9, %p222_p8 }
  0x19   :  { %230 = shalt.err (!%p227_p10)
}
  0x1a   :  { %s231_s4 = scalar_lea.vmem %s28_s24, 512  ;;  %p236_p12 = scmp.lt.s32.totalorder %s28_s24, %s28_s24 }
  0x1b   :  { %p232_p11 = scmp.ne.s32.totalorder %s28_s24, %s231_s4  ;;  %p237_p13 = scmp.lt.s32.totalorder %s231_s4, %s231_s4 }
  0x1d   :  { %p238_p0 = por %p237_p13, %p236_p12 }
  0x1f   :  { %p239_p1 = pnand %p238_p0, %p232_p11 }
  0x21   :  { %242 = shalt.err (!%p239_p1)
}
  0x22   :  { %33 = dma.hbm_to_vmem [thread:$0]  %s346_s1, 512, %s28_s24, [#allocation7], %s272_s19, %s272_s19, %s273_s20  }
  0x23   :  { %265 = dma.done.wait [#allocation4], 256  }
  0x24   :  { %266 = vsyncadd [#allocation4], 4294967040 }
  0x25   :  { %267 = dma.done.wait [#allocation7], 512  }
  0x26   :  { %268 = vsyncadd [#allocation7], 4294966784  ;;  %vm44_vm0 = vcmask 261120   ;;  %v275_v0 = vmov 0.0   ;;  %v51_v1 = vld [vmem:[#allocation6] sm:$0xff]  ;;  %v52_v2 = vld [vmem:[#allocation6 + $0x8] sm:$0xff] }
  0x27   :  { %46 = vst.msk [vmem:[#allocation2 + $0x8] sm:$0xff] %vm44_vm0, %v275_v0  ;;  %45 = vst.msk [vmem:[#allocation2] sm:$0xff] %vm44_vm0, %v275_v0  ;;  %v53_v3 = vld [vmem:[#allocation6 + $0x10] sm:$0xff]  ;;  %v185_v4 = vpack.c.bf16 %v52_v2, %v51_v1  ;;  %v54_v5 = vld [vmem:[#allocation6 + $0x18] sm:$0xff]  ;;  %s276_s1 = smov [#allocation8]  }
  0x28   :  { %v49_v6 = vld [vmem:[#allocation3] sm:$0xff]  ;;  %v189_v7 = vpack.c.bf16 %v54_v5, %v53_v3  ;;  %v50_v8 = vld [vmem:[#allocation3 + $0x8] sm:$0xff]  ;;  %s153_s6 = sshll.u32 %s276_s1, 4  ;;  %s154_s6 = int_to_ptr.vmem [resolvable:$true] %s153_s6 }
  0x29   :  { %182 = vmatprep.mubr.msk.f32.mxu0 %vm44_vm0, %v49_v6  ;;  %186 = vmatprep.subr.bf16.mxu0 %v185_v4  ;;  %s243_s7 = scalar_lea.vmem %s154_s6, 256  ;;  %p248_p3 = scmp.lt.s32.totalorder %s154_s6, %s154_s6 }
  0x2a   :  { %188 = vmatpush3.bf16.msra.mxu0 %v185_v4  ;;  %p244_p2 = scmp.ne.s32.totalorder %s154_s6, %s243_s7  ;;  %p249_p4 = scmp.lt.s32.totalorder %s243_s7, %s243_s7 }
  0x2b   :  { %190 = vmatprep.subr.bf16.mxu0 %v189_v7 }
  0x2c   :  { %p250_p5 = por %p249_p4, %p248_p3 }
  0x2e   :  { %192 = vmatpush3.bf16.msra.mxu0 %v189_v7  ;;  %v48_v9 = vld [vmem:[#allocation2 + $0x8] sm:$0xff]  ;;  %v47_v10 = vld [vmem:[#allocation2] sm:$0xff]  ;;  %p251_p6 = pnand %p250_p5, %p244_p2 }
  0x31   :  { %183 = vmatmul.mubr.msk.f32.vlgmr.msra.gmra.mrb[0].mxu0 %vm44_vm0, %v50_v8 }
 0x104   :  { %v184_v11 = vpop.f32.mrb[0].mxu0 }
 0x105   :  { %v138_v12 = vadd.f32 %v184_v11, %v48_v9  ;;  %v128_v13 = vpop.f32.mrb[1].mxu0 }
 0x106   :  { %v137_v14 = vadd.f32 %v128_v13, %v47_v10 }
 0x107   :  { %140 = vst.msk [vmem:[#allocation2 + $0x8] sm:$0xff] %vm44_vm0, %v138_v12 }
 0x108   :  { %139 = vst.msk [vmem:[#allocation2] sm:$0xff] %vm44_vm0, %v137_v14 }
 0x10e   :  { %v145_v15 = vld [vmem:[#allocation2 + $0x8] sm:$0xff] }
 0x10f   :  { %v144_v16 = vld [vmem:[#allocation2] sm:$0xff]  ;;  %147 = vst.msk [vmem:[#allocation8 + $0x8] sm:$0xff] %vm44_vm0, %v145_v15 }
 0x110   :  { %146 = vst.msk [vmem:[#allocation8] sm:$0xff] %vm44_vm0, %v144_v16 }
 0x111   :  { %254 = shalt.err (!%p251_p6)
}
 0x112   :  { %s255_s10 = scalar_lea.hbm %s347_s2, 256 }
 0x113   :  { %p256_p7 = scmp.ne.s32.totalorder %s347_s2, %s255_s10  ;;  %p259_p8 = scmp.lt.u32.totalorder %s255_s10, %s347_s2 }
 0x115   :  { %p261_p9 = pnand %p259_p8, %p256_p7 }
 0x117   :  { %264 = shalt.err (!%p261_p9)
}
 0x118   :  { %159 = dma.vmem_to_hbm [thread:$0]  %s154_s6, 256, %s347_s2, [#allocation5], %s272_s19, %s272_s19, %s273_s20  }
 0x119   :  { %269 = dma.done.wait [#allocation5], 256  }
 0x11a   :  { %270 = vsyncadd [#allocation5], 4294967040 }
 0x11b   :  { %163 = vsyncpa [#allocation4], 1 }
 0x11c   :  { %164 = vsyncpa [#allocation7], 1 }
 0x11d   :  { %165 = vsyncpa [#allocation5], 1 }

</bundles_post_ra>
